<compile_context>
chip_gen: v6e
topology: v6e:2x2x1
jax: 0.10.0
libtpu: 0.0.40
codegen_flags: <defaults>
</compile_context>

<pallas_src>
import functools

import jax
import jax.numpy as jnp
from jax.experimental import pallas as pl
from jax.experimental.pallas import tpu as pltpu

_NEG_SLOPE = 0.2  # nn.LeakyReLU(0.2) in AdaIN.forward and F.leaky_relu(0.2) in FC
_VMEM_LIMIT = 32 * 1024 * 1024  # safe scoped-VMEM request on v5e / v6e / v7x


def _round_up(x: int, m: int) -> int:
    return ((x + m - 1) // m) * m


def _leaky(v):
    return jnp.where(v >= 0, v, _NEG_SLOPE * v)


# ---------------- fused single-pass kernel: moments + normalize + style ----------------
def _fused_kernel(x_ref, gain_ref, bias_ref, y_ref, *, inv_hw, eps):
    a = _leaky(x_ref[...].astype(jnp.float32))                 # (TR, HWP), f32 stats
    s1 = jnp.sum(a, axis=-1, keepdims=True)
    s2 = jnp.sum(a * a, axis=-1, keepdims=True)
    mean = s1 * inv_hw
    var = s2 * inv_hw - mean * mean                            # biased var, matches torch ref
    inv_std = jax.lax.rsqrt(jnp.maximum(var, 0.0) + eps)
    scale = inv_std * gain_ref[...]                            # fold norm + style gain
    shift = bias_ref[...] - mean * scale                       # fold mean-subtract + style bias
    y_ref[...] = (a * scale + shift).astype(y_ref.dtype)


# ---------------- fallback pass A: per-(n,c) one-pass moments over HW ----------------
def _stats_kernel(x_ref, s1_ref, s2_ref):
    j = pl.program_id(1)  # HW-chunk (reduction) axis, innermost / "arbitrary"

    @pl.when(j == 0)
    def _init():
        s1_ref[...] = jnp.zeros_like(s1_ref)
        s2_ref[...] = jnp.zeros_like(s2_ref)

    a = _leaky(x_ref[...].astype(jnp.float32))
    s1_ref[...] += jnp.sum(a, axis=-1, keepdims=True)
    s2_ref[...] += jnp.sum(a * a, axis=-1, keepdims=True)


# ---------------- fallback pass B: lane-dense normalize + folded style affine ----------------
def _norm_kernel(x_ref, scale_ref, shift_ref, y_ref):
    a = _leaky(x_ref[...].astype(jnp.float32))
    y_ref[...] = (a * scale_ref[...] + shift_ref[...]).astype(y_ref.dtype)


def adain_forward(x_nchw, latent, style_w, style_b, *,
                  eps=1e-8, w_lrmul=1.0, b_lrmul=1.0, force_two_pass=False):
    """AdaIN forward (LeakyReLU -> InstanceNorm -> style modulation). Returns y (N,C,H,W)."""
    N, C, H, W = x_nchw.shape
    HW = H * W
    rows = N * C
    dtype = x_nchw.dtype
    itemsize = jnp.dtype(dtype).itemsize

    rows_p8 = _round_up(rows, 8)
    hw_p = _round_up(HW, 128)
    x2 = x_nchw.reshape(rows, HW)

    # ---- tiny style FC + per-row gain/bias: plain-JAX glue ----
    # TODO(synk): the style FC ((N,D)x(D,2C) matmul) is left to XLA; it is negligible
    # next to the sweep over x and keeps the kernel free of tiny-dot layouts.
    style = (latent.astype(jnp.float32) @ (style_w.astype(jnp.float32) * w_lrmul).T
             + style_b.astype(jnp.float32) * b_lrmul)
    style = _leaky(style).reshape(N, 2, C)                     # FC applies LeakyReLU(0.2)
    gain = (style[:, 0] + 1.0).reshape(rows, 1)                # multiplicative style
    bias = style[:, 1].reshape(rows, 1)                        # additive style

    # ---- choose fused row-block size so (x + y double-buffered + f32 temps) fit VMEM ----
    per_row_bytes = hw_p * (4 * itemsize + 12)                 # conservative estimate
    tr_fused = min((20 * 1024 * 1024 // per_row_bytes) // 8 * 8, 512, rows_p8)
    use_fused = (not force_two_pass) and tr_fused >= 8

    if use_fused:
        # ---------------- fused single-pass path: x read once, y written once ----------------
        TR = tr_fused
        rows_p = _round_up(rows_p8, TR)
        x_pad = jnp.pad(x2, ((0, rows_p - rows), (0, hw_p - HW)))
        gain_p = jnp.pad(gain.astype(jnp.float32), ((0, rows_p - rows), (0, 0)))
        bias_p = jnp.pad(bias.astype(jnp.float32), ((0, rows_p - rows), (0, 0)))

        kern = functools.partial(_fused_kernel, inv_hw=1.0 / HW, eps=float(eps))
        y = pl.pallas_call(
            kern,
            grid=(rows_p // TR,),
            in_specs=[pl.BlockSpec((TR, hw_p), lambda i: (i, 0)),
                      pl.BlockSpec((TR, 1), lambda i: (i, 0)),
                      pl.BlockSpec((TR, 1), lambda i: (i, 0))],
            out_specs=pl.BlockSpec((TR, hw_p), lambda i: (i, 0)),
            out_shape=jax.ShapeDtypeStruct((rows_p, hw_p), dtype),
            compiler_params=pltpu.CompilerParams(
                dimension_semantics=("parallel",),
                vmem_limit_bytes=_VMEM_LIMIT),
        )(x_pad, gain_p, bias_p)
        return y[:rows, :HW].reshape(N, C, H, W)

    # ---------------- two-pass fallback: H*W too large for one VMEM block ----------------
    TR = min(rows_p8, 256)                # multiple of 8
    rows_p = _round_up(rows_p8, TR)
    THW = min(hw_p, 512)                  # multiple of 128 -> lane-dense y stores
    hw_pp = _round_up(hw_p, THW)
    grid = (rows_p // TR, hw_pp // THW)

    x_pad = jnp.pad(x2, ((0, rows_p - rows), (0, hw_pp - HW)))

    # pass A: partial sums / sums-of-squares per (n, c)
    s1, s2 = pl.pallas_call(
        _stats_kernel,
        grid=grid,
        in_specs=[pl.BlockSpec((TR, THW), lambda i, j: (i, j))],
        out_specs=[pl.BlockSpec((TR, 1), lambda i, j: (i, 0)),
                   pl.BlockSpec((TR, 1), lambda i, j: (i, 0))],
        out_shape=[jax.ShapeDtypeStruct((rows_p, 1), jnp.float32),
                   jax.ShapeDtypeStruct((rows_p, 1), jnp.float32)],
        compiler_params=pltpu.CompilerParams(
            dimension_semantics=("parallel", "arbitrary"),
            vmem_limit_bytes=_VMEM_LIMIT),
    )(x_pad)

    # tiny O(N*C) finalize: fold mean / inv_std / style into per-row scale/shift
    mean = s1[:rows, 0] / HW
    var = s2[:rows, 0] / HW - mean * mean
    inv_std = jax.lax.rsqrt(jnp.maximum(var, 0.0) + eps)
    scale = inv_std * gain[:, 0]
    shift = bias[:, 0] - mean * scale
    scale_r = jnp.pad(scale.reshape(rows, 1).astype(jnp.float32),
                      ((0, rows_p - rows), (0, 0)))
    shift_r = jnp.pad(shift.reshape(rows, 1).astype(jnp.float32),
                      ((0, rows_p - rows), (0, 0)))

    # pass B: fully parallel normalize / style application
    y = pl.pallas_call(
        _norm_kernel,
        grid=grid,
        in_specs=[pl.BlockSpec((TR, THW), lambda i, j: (i, j)),
                  pl.BlockSpec((TR, 1), lambda i, j: (i, 0)),
                  pl.BlockSpec((TR, 1), lambda i, j: (i, 0))],
        out_specs=pl.BlockSpec((TR, THW), lambda i, j: (i, j)),
        out_shape=jax.ShapeDtypeStruct((rows_p, hw_pp), dtype),
        compiler_params=pltpu.CompilerParams(
            dimension_semantics=("parallel", "parallel"),
            vmem_limit_bytes=_VMEM_LIMIT),
    )(x_pad, scale_r, shift_r)

    return y[:rows, :HW].reshape(N, C, H, W)


# ---------------- plain-JAX reference mirroring the PyTorch forward ----------------
def _reference(x, latent, style_w, style_b, eps=1e-8):
    a = _leaky(x.astype(jnp.float32))
    mean = a.mean((2, 3), keepdims=True)
    ac = a - mean
    inv = jax.lax.rsqrt((ac * ac).mean((2, 3), keepdims=True) + eps)
    xn = ac * inv
    style = latent.astype(jnp.float32) @ style_w.astype(jnp.float32).T + style_b
    style = _leaky(style)
    style = style.reshape(-1, 2, x.shape[1], 1, 1)
    return xn * (style[:, 0] + 1.0) + style[:, 1]


if __name__ == "__main__":
    key = jax.random.PRNGKey(0)
    N, C, H, W = 2, 4, 16, 16
    D = 32  # dlatent_size

    kx, kl, kw = jax.random.split(key, 3)
    x = jax.random.normal(kx, (N, C, H, W), dtype=jnp.float32)
    latent = jax.random.normal(kl, (N, D), dtype=jnp.float32)

    # ApplyStyle's FC init: gain=1.0, use_wscale=False, lrmul=1.0
    he_std = 1.0 * D ** (-0.5)
    style_w = jax.random.normal(kw, (2 * C, D), dtype=jnp.float32) * he_std
    style_b = jnp.zeros((2 * C,), jnp.float32)

    # TODO(synk): ApplyNoise / PixelNorm branches are disabled in the default AdaIN
    # config (use_noise=False, use_pixel_norm=False) and are not implemented here.

    y_ref = _reference(x, latent, style_w, style_b)

    # fused single-pass path (f32)
    y = adain_forward(x, latent, style_w, style_b)
    jax.block_until_ready(y)
    assert y.shape == (N, C, H, W)
    assert jnp.allclose(y, y_ref, atol=1e-4, rtol=1e-4), "fused path mismatch (f32)"

    # two-pass fallback path (f32) exercised explicitly for coverage
    y2 = adain_forward(x, latent, style_w, style_b, force_two_pass=True)
    jax.block_until_ready(y2)
    assert jnp.allclose(y2, y_ref, atol=1e-4, rtol=1e-4), "two-pass path mismatch (f32)"

    # bf16 activation path: x/y in bf16 end-to-end, statistics still f32 in-kernel
    x_bf = x.astype(jnp.bfloat16)
    y_bf = adain_forward(x_bf, latent, style_w, style_b)
    jax.block_until_ready(y_bf)
    y_bf_ref = _reference(x_bf.astype(jnp.float32), latent, style_w, style_b)
    assert y_bf.dtype == jnp.bfloat16
    assert jnp.allclose(y_bf.astype(jnp.float32), y_bf_ref, atol=1e-1, rtol=1e-1), \
        "fused path mismatch (bf16)"

    print("KERNEL_OK")
</pallas_src>

<mosaic_0001>
module attributes {stable_mosaic.version = 11 : i64} {
  func.func @_fused_kernel(%arg0: i32, %arg1: memref<8x256xf32, #tpu.memory_space<vmem>>, %arg2: memref<8x1xf32, #tpu.memory_space<vmem>>, %arg3: memref<8x1xf32, #tpu.memory_space<vmem>>, %arg4: memref<8x256xf32, #tpu.memory_space<vmem>>) attributes {dimension_semantics = [#tpu.dimension_semantics<parallel>], iteration_bounds = array<i64: 1>, scalar_prefetch = 0 : i64, scratch_operands = 0 : i64, tpu.core_type = #tpu.core_type<tc>, window_params = [{transform_indices = @transform_0, window_bounds = array<i64: 8, 256>}, {transform_indices = @transform_1, window_bounds = array<i64: 8, 1>}, {transform_indices = @transform_2, window_bounds = array<i64: 8, 1>}, {transform_indices = @transform_3, window_bounds = array<i64: 8, 256>}]} {
    %c0 = arith.constant 0 : index
    %c0_0 = arith.constant 0 : index
    %0 = vector.load %arg1[%c0, %c0_0] : memref<8x256xf32, #tpu.memory_space<vmem>>, vector<8x256xf32>
    %cst = arith.constant 0.000000e+00 : f32
    %1 = vector.broadcast %cst : f32 to vector<8x256xf32>
    %2 = arith.cmpf oge, %0, %1 : vector<8x256xf32>
    %cst_1 = arith.constant 2.000000e-01 : f32
    %3 = vector.broadcast %cst_1 : f32 to vector<8x256xf32>
    %4 = arith.mulf %3, %0 : vector<8x256xf32>
    %5 = arith.select %2, %0, %4 : vector<8x256xi1>, vector<8x256xf32>
    %cst_2 = arith.constant dense<0.000000e+00> : vector<8xf32>
    %6 = vector.multi_reduction <add>, %5, %cst_2 [1] : vector<8x256xf32> to vector<8xf32>
    %7 = vector.shape_cast %6 : vector<8xf32> to vector<8x1xf32>
    %8 = arith.mulf %5, %5 : vector<8x256xf32>
    %cst_3 = arith.constant dense<0.000000e+00> : vector<8xf32>
    %9 = vector.multi_reduction <add>, %8, %cst_3 [1] : vector<8x256xf32> to vector<8xf32>
    %10 = vector.shape_cast %9 : vector<8xf32> to vector<8x1xf32>
    %cst_4 = arith.constant 3.906250e-03 : f32
    %11 = vector.broadcast %cst_4 : f32 to vector<8x1xf32>
    %12 = arith.mulf %7, %11 : vector<8x1xf32>
    %cst_5 = arith.constant 3.906250e-03 : f32
    %13 = vector.broadcast %cst_5 : f32 to vector<8x1xf32>
    %14 = arith.mulf %10, %13 : vector<8x1xf32>
    %15 = arith.mulf %12, %12 : vector<8x1xf32>
    %16 = arith.subf %14, %15 : vector<8x1xf32>
    %cst_6 = arith.constant 0.000000e+00 : f32
    %17 = vector.broadcast %cst_6 : f32 to vector<8x1xf32>
    %18 = arith.maximumf %16, %17 : vector<8x1xf32>
    %cst_7 = arith.constant 9.99999993E-9 : f32
    %19 = vector.broadcast %cst_7 : f32 to vector<8x1xf32>
    %20 = arith.addf %18, %19 : vector<8x1xf32>
    %21 = math.rsqrt %20 : vector<8x1xf32>
    %c0_8 = arith.constant 0 : index
    %c0_9 = arith.constant 0 : index
    %22 = vector.load %arg2[%c0_8, %c0_9] : memref<8x1xf32, #tpu.memory_space<vmem>>, vector<8x1xf32>
    %23 = arith.mulf %21, %22 : vector<8x1xf32>
    %c0_10 = arith.constant 0 : index
    %c0_11 = arith.constant 0 : index
    %24 = vector.load %arg3[%c0_10, %c0_11] : memref<8x1xf32, #tpu.memory_space<vmem>>, vector<8x1xf32>
    %25 = arith.mulf %12, %23 : vector<8x1xf32>
    %26 = arith.subf %24, %25 : vector<8x1xf32>
    %27 = vector.broadcast %23 : vector<8x1xf32> to vector<8x256xf32>
    %28 = arith.mulf %5, %27 : vector<8x256xf32>
    %29 = vector.broadcast %26 : vector<8x1xf32> to vector<8x256xf32>
    %30 = arith.addf %28, %29 : vector<8x256xf32>
    %c0_12 = arith.constant 0 : index
    %c0_13 = arith.constant 0 : index
    %31 = vector.load %arg4[%c0_12, %c0_13] : memref<8x256xf32, #tpu.memory_space<vmem>>, vector<8x256xf32>
    tpu.vector_store %arg4[%c0_12, %c0_13], %30 {strides = array<i32>} : memref<8x256xf32, #tpu.memory_space<vmem>>, vector<8x256xf32>,
    return
  }
  func.func @transform_0(%arg0: i32) -> (i32, i32) {
    %c0_i32 = arith.constant 0 : i32
    %c0_i32_0 = arith.constant 0 : i32
    return %arg0, %c0_i32 : i32, i32
  }
  func.func @transform_1(%arg0: i32) -> (i32, i32) {
    %c0_i32 = arith.constant 0 : i32
    %c0_i32_0 = arith.constant 0 : i32
    return %arg0, %c0_i32 : i32, i32
  }
  func.func @transform_2(%arg0: i32) -> (i32, i32) {
    %c0_i32 = arith.constant 0 : i32
    %c0_i32_0 = arith.constant 0 : i32
    return %arg0, %c0_i32 : i32, i32
  }
  func.func @transform_3(%arg0: i32) -> (i32, i32) {
    %c0_i32 = arith.constant 0 : i32
    %c0_i32_0 = arith.constant 0 : i32
    return %arg0, %c0_i32 : i32, i32
  }
}

</mosaic_0001>

<bundles_post_ra>
// kernel: tpu_custom_call.1
= control target key start
LH: loop header
LB: loop body
LE: loop exit
PB: predicated region body
PF: predicated region fallthrough
CT: control target
= control target key end

     0   :  { %s138_s0 = inlined_call_operand.vmem [shape: f32[8,256], index: 0, kind: input, shape index: {}]   ;;  %s139_s1 = inlined_call_operand.vmem [shape: f32[8,1], index: 1, kind: input, shape index: {}]   ;;  %s140_s2 = inlined_call_operand.vmem [shape: f32[8,1], index: 2, kind: input, shape index: {}]   ;;  %s141_s3 = inlined_call_operand.hbm [shape: f32[8,256], index: 3, kind: output, shape index: {}]  }
   0x1   :  { %v15_v0 = vld [vmem:[%s138_s0] sm:$0xff]  ;;  %v16_v1 = vld [vmem:[%s138_s0 + $0x8] sm:$0xff] }
   0x2   :  { %8 = vsyncpa [#allocation3], 0  ;;  %vm17_vm0 = vcmp.ge.f32.partialorder %v15_v0, 0.0  ;;  %vm18_vm1 = vcmp.ge.f32.partialorder %v16_v1, 0.0  ;;  %v19_v2 = vmul.f32 0.2, %v15_v0 }
   0x3   :  { %v20_v3 = vmul.f32 0.2, %v16_v1  ;;  %v101_v10 = vmov 0   ;;  %v38_v19 = vld [vmem:[%s139_s1] sm:$0xff]  ;;  %s102_s19 = smov [#allocation2]  }
   0x4   :  { %v21_v4 = vsel %vm17_vm0, %v15_v0, %v19_v2  ;;  %75 = vset.pattern.permute.xlu1 %v101_v10  ;;  %76 = vset.pattern.permute.xlu0 %v101_v10  ;;  %v40_v22 = vld [vmem:[%s140_s2] sm:$0xff]  ;;  %s65_s20 = sshll.u32 %s102_s19, 4  ;;  %s66_s20 = int_to_ptr.vmem [resolvable:$true] %s65_s20 }
   0x5   :  { %v22_v5 = vsel %vm18_vm1, %v16_v1, %v20_v3  ;;  %v26_v7 = vmul.f32 %v21_v4, %v21_v4  ;;  %s79_s1 = scalar_lea.vmem %s66_s20, 256  ;;  %p84_p1 = scmp.lt.s32.totalorder %s66_s20, %s66_s20 }
   0x6   :  { %v23_v6 = vadd.f32 %v22_v5, %v21_v4  ;;  %v27_v8 = vmul.f32 %v22_v5, %v22_v5  ;;  %p80_p0 = scmp.ne.s32.totalorder %s66_s20, %s79_s1  ;;  %p85_p2 = scmp.lt.s32.totalorder %s79_s1, %s79_s1 }
   0x8   :  { %24 = vadd.xlane.f32.xlu0 %v23_v6  ;;  %v28_v9 = vadd.f32 %v27_v8, %v26_v7  ;;  %p86_p3 = por %p85_p2, %p84_p1 }
   0xa   :  { %p87_p4 = pnand %p86_p3, %p80_p0 }
   0xc   :  { %29 = vadd.xlane.f32.xlu0 %v28_v9 }
  0x91   :  { %v25_v11 = vpop.xlane.xlu0 %24 }
  0x92   :  { %v31_v12 = vmul.f32 0.00390625, %v25_v11 }
  0x94   :  { %v33_v14 = vmul.f32 %v31_v12, %v31_v12 }
  0x95   :  { %v30_v13 = vpop.xlane.xlu0 %29 }
  0x96   :  { %v32_v15 = vmul.f32 0.00390625, %v30_v13 }
  0x98   :  { %v34_v16 = vsub.f32 %v32_v15, %v33_v14 }
  0x9a   :  { %v35_v17 = vmax.f32 %v34_v16, 0.0 }
  0x9c   :  { %v36_v18 = vadd.f32 1e-08, %v35_v17 }
  0x9e   :  { %77 = vrsqrt.f32 %v36_v18 }
  0xab   :  { %v78_v20 = vpop.eup %77 }
  0xac   :  { %v39_v21 = vmul.f32 %v78_v20, %v38_v19 }
  0xae   :  { %45 = vperm.xlu1 %75, %v39_v21   ;;  %v41_v23 = vmul.f32 %v39_v21, %v31_v12 }
  0xb0   :  { %v42_v24 = vsub.f32 %v40_v22, %v41_v23 }
  0xb2   :  { %52 = vperm.xlu1 %75, %v42_v24  }
 0x129   :  { %v46_v25 = vpop.permute.xlu1 %45 }
 0x12a   :  { %v48_v26 = vmul.f32 %v46_v25, %v21_v4  ;;  %v49_v27 = vmul.f32 %v46_v25, %v22_v5 }
 0x12d   :  { %v53_v28 = vpop.permute.xlu1 %52 }
 0x12e   :  { %v55_v29 = vadd.f32 %v53_v28, %v48_v26  ;;  %v56_v30 = vadd.f32 %v53_v28, %v49_v27 }
 0x130   :  { %57 = vst [vmem:[#allocation2] sm:$0xff] %v55_v29  ;;  %58 = vst [vmem:[#allocation2 + $0x8] sm:$0xff] %v56_v30 }
 0x131   :  { %90 = shalt.err (!%p87_p4)
}
 0x132   :  { %68 = dma.vmem_to_hbm [thread:$0]  %s66_s20, 256, %s141_s3, [#allocation3]  }
 0x133   :  { %99 = dma.done.wait [#allocation3], 256  }
 0x134   :  { %100 = vsyncadd [#allocation3], 4294967040 }
 0x135   :  { %72 = vsyncpa [#allocation3], 1 }

</bundles_post_ra>
